<compile_context>
chip_gen: v6e
topology: v6e:2x2x1
jax: 0.10.0
libtpu: 0.0.40
codegen_flags: <defaults>
</compile_context>

<pallas_src>
import jax
import jax.numpy as jnp
from jax.experimental import pallas as pl
from jax.experimental.pallas import tpu as pltpu


def _cdiv(a, b):
    return -(-a // b)


def _round_up(x, m):
    return ((x + m - 1) // m) * m


def _critic_heads_kernel(s_ref, a_ref, w1s_ref, w1a_ref, b1_ref, w2_ref,
                         b2_ref, wq_ref, bq_ref, out_ref):
    # Activations are cast to the weight dtype (f32 or bf16) only for the MXU;
    # accumulation, bias-add and ReLU stay in f32 (works on v5e/v6e/v7x).
    s = s_ref[...].astype(w1s_ref.dtype)
    a = a_ref[...].astype(w1a_ref.dtype)

    # Fused concat: concat(state, action) @ W1  ==  state @ W1_s + action @ W1_a.
    h1 = (jnp.dot(s, w1s_ref[...], preferred_element_type=jnp.float32)
          + jnp.dot(a, w1a_ref[...], preferred_element_type=jnp.float32)
          + b1_ref[...])
    h1 = jnp.maximum(h1, 0.0)

    h2 = jnp.dot(h1.astype(w2_ref.dtype), w2_ref[...],
                 preferred_element_type=jnp.float32) + b2_ref[...]
    h2 = jnp.maximum(h2, 0.0)

    # Q head(s): (num_q, mid) x (tb, mid) -> (num_q, tb).  The result is
    # lane-major (batch along lanes), so the output store is full-width and the
    # twin head rides along in the same pass.
    q = jnp.einsum("qm,bm->qb", wq_ref[...], h2,
                   preferred_element_type=jnp.float32) + bq_ref[...]
    out_ref[...] = q[None, :, :].astype(out_ref.dtype)


def _critic_heads(state, action, w1s, w1a, b1, w2, b2, wq, bq, block_batch):
    """Shared trunk + num_q heads. Returns q of shape (num_q, B), float32."""
    B, state_dim = state.shape
    action_dim = action.shape[1]
    mid_dim = w1s.shape[1]
    num_q = wq.shape[0]

    # --- batch tiling ------------------------------------------------------
    block_batch = max(8, _round_up(block_batch, 8))
    # At least 2 tiles when the batch allows it, so "parallel" really shards
    # the batch axis across v7x's two TensorCores; tb (nearly) divides B so the
    # host-side pad is at most a few sublanes.
    n_tiles = max(_cdiv(B, block_batch), min(2, B // 8), 1)
    tb = _round_up(_cdiv(B, n_tiles), 8)
    b_pad = _round_up(B, tb)
    n_grid = b_pad // tb
    if b_pad != B:  # tiny tail pad (< tb rows); padded rows are sliced off below
        state = jnp.pad(state, ((0, b_pad - B), (0, 0)))
        action = jnp.pad(action, ((0, b_pad - B), (0, 0)))

    # --- VMEM budget (re-derived so it also fits v7x's 64 MiB) -------------
    w_itemsize = jnp.dtype(w1s.dtype).itemsize
    weight_bytes = ((state_dim + action_dim + mid_dim) * mid_dim * w_itemsize
                    + (2 * mid_dim + num_q * mid_dim + num_q) * 4)
    act_bytes = 2 * tb * (state_dim + action_dim) * state.dtype.itemsize
    out_bytes = 2 * max(8, num_q) * tb * 4
    interm_bytes = tb * mid_dim * (8 + (2 * w_itemsize if w_itemsize != 4 else 0))
    est = 2 * weight_bytes + act_bytes + out_bytes + interm_bytes
    vmem_limit = int(min(64 * 1024 * 1024, max(32 * 1024 * 1024, 2 * est)))

    # --- advisory cost estimate --------------------------------------------
    flops = 2 * b_pad * ((state_dim + action_dim) * mid_dim
                         + mid_dim * mid_dim + num_q * mid_dim)
    param_bytes = sum(int(x.size) * x.dtype.itemsize
                      for x in (w1s, w1a, b1, w2, b2, wq, bq))
    bytes_accessed = (b_pad * (state_dim + action_dim) * state.dtype.itemsize
                      + b_pad * num_q * 4 + param_bytes)
    cost = pl.CostEstimate(flops=flops, transcendentals=0,
                           bytes_accessed=bytes_accessed)

    tile = lambda i: (i, 0)        # batch-tiled activations
    resident = lambda i: (0, 0)    # weights & biases stay resident across steps

    def call(weight_pipeline_mode):
        kw = ({} if weight_pipeline_mode is None
              else dict(pipeline_mode=weight_pipeline_mode))
        in_specs = [
            pl.BlockSpec((tb, state_dim), tile),            # state
            pl.BlockSpec((tb, action_dim), tile),           # action
            pl.BlockSpec((state_dim, mid_dim), resident, **kw),   # W1_s
            pl.BlockSpec((action_dim, mid_dim), resident, **kw),  # W1_a
            pl.BlockSpec((1, mid_dim), resident, **kw),            # b1
            pl.BlockSpec((mid_dim, mid_dim), resident, **kw),      # W2
            pl.BlockSpec((1, mid_dim), resident, **kw),            # b2
            pl.BlockSpec((num_q, mid_dim), resident, **kw),        # Wq rows
            pl.BlockSpec((num_q, 1), resident, **kw),              # bq
        ]
        return pl.pallas_call(
            _critic_heads_kernel,
            out_shape=jax.ShapeDtypeStruct((n_grid, num_q, tb), jnp.float32),
            grid=(n_grid,),
            in_specs=in_specs,
            out_specs=pl.BlockSpec((1, num_q, tb), lambda i: (i, 0, 0)),
            compiler_params=pltpu.CompilerParams(
                dimension_semantics=("parallel",),
                vmem_limit_bytes=vmem_limit),
            cost_estimate=cost,
        )(state, action, w1s, w1a, b1, w2, b2, wq, bq)

    try:
        # Single-buffer the never-re-fetched weight/bias blocks (halves their
        # VMEM footprint; matters most under v7x's 64 MiB).
        out = call(pl.Buffered(1))
    except Exception:
        # Older / stricter jax: fall back to default double-buffering.
        out = call(None)

    # (n_grid, num_q, tb) -> (num_q, b_pad) -> (num_q, B)
    q = jnp.transpose(out, (1, 0, 2)).reshape(num_q, n_grid * tb)[:, :B]
    return q


def critic_q1(state, action, params, *, block_batch=1024):
    """CriticTwin.forward: returns q1 of shape (B, 1)."""
    w1s, w1a, b1, w2, b2, wq, bq = params
    q = _critic_heads(state, action, w1s, w1a, b1, w2, b2,
                      wq[:1], bq[:1], block_batch)
    return q[0][:, None]


def critic_q1_q2(state, action, params, *, block_batch=1024):
    """CriticTwin.get_q1_q2: both heads fused into a single kernel call."""
    w1s, w1a, b1, w2, b2, wq, bq = params
    q = _critic_heads(state, action, w1s, w1a, b1, w2, b2, wq, bq, block_batch)
    return q[0][:, None], q[1][:, None]


def _orthogonal_rows(key, rows, n, gain=1.0):
    # torch.nn.init.orthogonal_ on a (rows, n) weight with rows << n:
    # orthonormal rows (up to sign), scaled by gain.
    a = jax.random.normal(key, (n, rows), dtype=jnp.float32)
    q, _ = jnp.linalg.qr(a)            # (n, rows), orthonormal columns
    return gain * q.T                  # (rows, n)


def make_params(key, state_dim, action_dim, mid_dim, *, mxu_dtype=jnp.float32):
    """Deterministic params. Trunk weights pre-transposed to [in, out] and W1
    pre-split into state/action halves (fused concat). Matmul weights may be
    stored in bf16 on any TPU generation (f32 accumulation in-kernel)."""
    k1, k2, k3, k4, k5 = jax.random.split(key, 5)
    in_dim = state_dim + action_dim
    lim1 = 1.0 / (in_dim ** 0.5)
    lim2 = 1.0 / (mid_dim ** 0.5)
    w1 = jax.random.uniform(k1, (in_dim, mid_dim), jnp.float32, -lim1, lim1)
    b1 = jax.random.uniform(k2, (1, mid_dim), jnp.float32, -lim1, lim1)
    w2 = jax.random.uniform(k3, (mid_dim, mid_dim), jnp.float32, -lim2, lim2)
    b2 = jax.random.uniform(k4, (1, mid_dim), jnp.float32, -lim2, lim2)
    # net_q1 / net_q2: layer_norm(layer, std=0.1) -> orthogonal * 0.1, bias 1e-6.
    wq = _orthogonal_rows(k5, 2, mid_dim, gain=0.1)        # stays f32
    bq = jnp.full((2, 1), 1e-6, dtype=jnp.float32)
    w1s = w1[:state_dim].astype(mxu_dtype)
    w1a = w1[state_dim:].astype(mxu_dtype)
    return (w1s, w1a, b1, w2.astype(mxu_dtype), b2, wq, bq)


def _reference(state, action, params):
    """Pure-JAX reference: returns (B, 2) with columns [q1, q2]."""
    w1s, w1a, b1, w2, b2, wq, bq = params
    f32 = jnp.float32
    h1 = jnp.maximum(state @ w1s.astype(f32) + action @ w1a.astype(f32) + b1, 0.0)
    h2 = jnp.maximum(h1 @ w2.astype(f32) + b2, 0.0)
    return h2 @ wq.T + bq.T


if __name__ == "__main__":
    state_dim, action_dim, mid_dim = 12, 4, 32
    key = jax.random.PRNGKey(0)
    ks, ka, kp = jax.random.split(key, 3)
    params = make_params(kp, state_dim, action_dim, mid_dim)

    # 1) Small batch (single tile, f32 weights) -- forward() path.
    B = 8
    state = jax.random.normal(ks, (B, state_dim), dtype=jnp.float32)
    action = jax.random.normal(ka, (B, action_dim), dtype=jnp.float32)
    q1 = jax.block_until_ready(critic_q1(state, action, params))
    ref = _reference(state, action, params)
    assert q1.shape == (B, 1)
    assert jnp.allclose(q1, ref[:, :1], atol=1e-3, rtol=1e-3)

    # 2) Larger batch: tb is chosen to divide B exactly (no host-side pad),
    #    3-tile grid sharded across TensorCores.
    kb = jax.random.PRNGKey(1)
    ks2, ka2 = jax.random.split(kb)
    B2 = 600
    state2 = jax.random.normal(ks2, (B2, state_dim), dtype=jnp.float32)
    action2 = jax.random.normal(ka2, (B2, action_dim), dtype=jnp.float32)
    q1_big = jax.block_until_ready(
        critic_q1(state2, action2, params, block_batch=256))
    ref2 = _reference(state2, action2, params)
    assert q1_big.shape == (B2, 1)
    assert jnp.allclose(q1_big, ref2[:, :1], atol=1e-3, rtol=1e-3)

    # 3) Fused twin-Q (get_q1_q2) on a non-tile-aligned batch (exercises the
    #    tiny tail-padding path).
    B3 = 21
    ks3, ka3 = jax.random.split(jax.random.PRNGKey(2))
    state3 = jax.random.normal(ks3, (B3, state_dim), dtype=jnp.float32)
    action3 = jax.random.normal(ka3, (B3, action_dim), dtype=jnp.float32)
    q1_t, q2_t = critic_q1_q2(state3, action3, params)
    jax.block_until_ready((q1_t, q2_t))
    ref3 = _reference(state3, action3, params)
    assert q1_t.shape == (B3, 1) and q2_t.shape == (B3, 1)
    assert jnp.allclose(q1_t, ref3[:, :1], atol=1e-3, rtol=1e-3)
    assert jnp.allclose(q2_t, ref3[:, 1:], atol=1e-3, rtol=1e-3)

    # 4) bf16 MXU-weight path (valid on v5e/v6e/v7x; f32 accumulate/bias/ReLU).
    params_bf16 = make_params(kp, state_dim, action_dim, mid_dim,
                              mxu_dtype=jnp.bfloat16)
    q1_bf16 = jax.block_until_ready(critic_q1(state, action, params_bf16))
    assert q1_bf16.shape == (B, 1)
    assert jnp.allclose(q1_bf16, ref[:, :1], atol=1e-1, rtol=1e-1)

    print("KERNEL_OK")
</pallas_src>

<mosaic_0001>
module attributes {stable_mosaic.version = 11 : i64} {
  func.func @_critic_heads_kernel(%arg0: i32, %arg1: memref<8x12xf32, #tpu.memory_space<vmem>>, %arg2: memref<8x4xf32, #tpu.memory_space<vmem>>, %arg3: memref<12x32xf32, #tpu.memory_space<vmem>>, %arg4: memref<4x32xf32, #tpu.memory_space<vmem>>, %arg5: memref<1x32xf32, #tpu.memory_space<vmem>>, %arg6: memref<32x32xf32, #tpu.memory_space<vmem>>, %arg7: memref<1x32xf32, #tpu.memory_space<vmem>>, %arg8: memref<1x32xf32, #tpu.memory_space<vmem>>, %arg9: memref<1x1xf32, #tpu.memory_space<vmem>>, %arg10: memref<1x1x8xf32, #tpu.memory_space<vmem>>) attributes {dimension_semantics = [#tpu.dimension_semantics<parallel>], iteration_bounds = array<i64: 1>, scalar_prefetch = 0 : i64, scratch_operands = 0 : i64, tpu.core_type = #tpu.core_type<tc>, window_params = [{transform_indices = @transform_0, window_bounds = array<i64: 8, 12>}, {transform_indices = @transform_1, window_bounds = array<i64: 8, 4>}, {pipeline_mode = #tpu.pipeline_mode<synchronous>, transform_indices = @transform_2, window_bounds = array<i64: 12, 32>}, {pipeline_mode = #tpu.pipeline_mode<synchronous>, transform_indices = @transform_3, window_bounds = array<i64: 4, 32>}, {pipeline_mode = #tpu.pipeline_mode<synchronous>, transform_indices = @transform_4, window_bounds = array<i64: 1, 32>}, {pipeline_mode = #tpu.pipeline_mode<synchronous>, transform_indices = @transform_5, window_bounds = array<i64: 32, 32>}, {pipeline_mode = #tpu.pipeline_mode<synchronous>, transform_indices = @transform_6, window_bounds = array<i64: 1, 32>}, {pipeline_mode = #tpu.pipeline_mode<synchronous>, transform_indices = @transform_7, window_bounds = array<i64: 1, 32>}, {pipeline_mode = #tpu.pipeline_mode<synchronous>, transform_indices = @transform_8, window_bounds = array<i64: 1, 1>}, {transform_indices = @transform_9, window_bounds = array<i64: 1, 1, 8>}]} {
    %c0 = arith.constant 0 : index
    %c0_0 = arith.constant 0 : index
    %0 = vector.load %arg1[%c0, %c0_0] : memref<8x12xf32, #tpu.memory_space<vmem>>, vector<8x12xf32>
    %c0_1 = arith.constant 0 : index
    %c0_2 = arith.constant 0 : index
    %1 = vector.load %arg2[%c0_1, %c0_2] : memref<8x4xf32, #tpu.memory_space<vmem>>, vector<8x4xf32>
    %c0_3 = arith.constant 0 : index
    %c0_4 = arith.constant 0 : index
    %2 = vector.load %arg3[%c0_3, %c0_4] : memref<12x32xf32, #tpu.memory_space<vmem>>, vector<12x32xf32>
    %cst = arith.constant dense<0.000000e+00> : vector<8x32xf32>
    %3 = tpu.matmul %0, %2, %cst {dimension_numbers = #tpu.dot_dimension_numbers<[1], [0], [0], [1], [0, 0, 1, 1], [], []>} : vector<8x12xf32>, vector<12x32xf32>, vector<8x32xf32> -> vector<8x32xf32>
    %c0_5 = arith.constant 0 : index
    %c0_6 = arith.constant 0 : index
    %4 = vector.load %arg4[%c0_5, %c0_6] : memref<4x32xf32, #tpu.memory_space<vmem>>, vector<4x32xf32>
    %cst_7 = arith.constant dense<0.000000e+00> : vector<8x32xf32>
    %5 = tpu.matmul %1, %4, %cst_7 {dimension_numbers = #tpu.dot_dimension_numbers<[1], [0], [0], [1], [0, 0, 1, 1], [], []>} : vector<8x4xf32>, vector<4x32xf32>, vector<8x32xf32> -> vector<8x32xf32>
    %6 = arith.addf %3, %5 : vector<8x32xf32>
    %c0_8 = arith.constant 0 : index
    %c0_9 = arith.constant 0 : index
    %7 = vector.load %arg5[%c0_8, %c0_9] : memref<1x32xf32, #tpu.memory_space<vmem>>, vector<1x32xf32>
    %8 = vector.broadcast %7 : vector<1x32xf32> to vector<8x32xf32>
    %9 = arith.addf %6, %8 : vector<8x32xf32>
    %cst_10 = arith.constant 0.000000e+00 : f32
    %10 = vector.broadcast %cst_10 : f32 to vector<8x32xf32>
    %11 = arith.maximumf %9, %10 : vector<8x32xf32>
    %c0_11 = arith.constant 0 : index
    %c0_12 = arith.constant 0 : index
    %12 = vector.load %arg6[%c0_11, %c0_12] : memref<32x32xf32, #tpu.memory_space<vmem>>, vector<32x32xf32>
    %cst_13 = arith.constant dense<0.000000e+00> : vector<8x32xf32>
    %13 = tpu.matmul %11, %12, %cst_13 {dimension_numbers = #tpu.dot_dimension_numbers<[1], [0], [0], [1], [0, 0, 1, 1], [], []>} : vector<8x32xf32>, vector<32x32xf32>, vector<8x32xf32> -> vector<8x32xf32>
    %c0_14 = arith.constant 0 : index
    %c0_15 = arith.constant 0 : index
    %14 = vector.load %arg7[%c0_14, %c0_15] : memref<1x32xf32, #tpu.memory_space<vmem>>, vector<1x32xf32>
    %15 = vector.broadcast %14 : vector<1x32xf32> to vector<8x32xf32>
    %16 = arith.addf %13, %15 : vector<8x32xf32>
    %cst_16 = arith.constant 0.000000e+00 : f32
    %17 = vector.broadcast %cst_16 : f32 to vector<8x32xf32>
    %18 = arith.maximumf %16, %17 : vector<8x32xf32>
    %c0_17 = arith.constant 0 : index
    %c0_18 = arith.constant 0 : index
    %19 = vector.load %arg8[%c0_17, %c0_18] : memref<1x32xf32, #tpu.memory_space<vmem>>, vector<1x32xf32>
    "tpu.trace_start"() <{level = 10 : i32, message = "qm,bm->qb"}> : () -> ()
    %cst_19 = arith.constant dense<0.000000e+00> : vector<1x8xf32>
    %20 = tpu.matmul %19, %18, %cst_19 {dimension_numbers = #tpu.dot_dimension_numbers<[1], [1], [0], [0], [0, 0, 1, 0], [], []>} : vector<1x32xf32>, vector<8x32xf32>, vector<1x8xf32> -> vector<1x8xf32>
    "tpu.trace_stop"() : () -> ()
    %c0_20 = arith.constant 0 : index
    %c0_21 = arith.constant 0 : index
    %21 = vector.load %arg9[%c0_20, %c0_21] : memref<1x1xf32, #tpu.memory_space<vmem>>, vector<1x1xf32>
    %22 = vector.broadcast %21 : vector<1x1xf32> to vector<1x8xf32>
    %23 = arith.addf %20, %22 : vector<1x8xf32>
    %24 = vector.shape_cast %23 : vector<1x8xf32> to vector<1x1x8xf32>
    %c0_22 = arith.constant 0 : index
    %c0_23 = arith.constant 0 : index
    %c0_24 = arith.constant 0 : index
    %25 = vector.load %arg10[%c0_22, %c0_23, %c0_24] : memref<1x1x8xf32, #tpu.memory_space<vmem>>, vector<1x1x8xf32>
    tpu.vector_store %arg10[%c0_22, %c0_23, %c0_24], %24 {strides = array<i32>} : memref<1x1x8xf32, #tpu.memory_space<vmem>>, vector<1x1x8xf32>,
    return
  }
  func.func @transform_0(%arg0: i32) -> (i32, i32) {
    %c0_i32 = arith.constant 0 : i32
    %c0_i32_0 = arith.constant 0 : i32
    return %arg0, %c0_i32 : i32, i32
  }
  func.func @transform_1(%arg0: i32) -> (i32, i32) {
    %c0_i32 = arith.constant 0 : i32
    %c0_i32_0 = arith.constant 0 : i32
    return %arg0, %c0_i32 : i32, i32
  }
  func.func @transform_2(%arg0: i32) -> (i32, i32) {
    %c0_i32 = arith.constant 0 : i32
    %c0_i32_0 = arith.constant 0 : i32
    %c0_i32_1 = arith.constant 0 : i32
    return %c0_i32, %c0_i32_0 : i32, i32
  }
  func.func @transform_3(%arg0: i32) -> (i32, i32) {
    %c0_i32 = arith.constant 0 : i32
    %c0_i32_0 = arith.constant 0 : i32
    %c0_i32_1 = arith.constant 0 : i32
    return %c0_i32, %c0_i32_0 : i32, i32
  }
  func.func @transform_4(%arg0: i32) -> (i32, i32) {
    %c0_i32 = arith.constant 0 : i32
    %c0_i32_0 = arith.constant 0 : i32
    %c0_i32_1 = arith.constant 0 : i32
    return %c0_i32, %c0_i32_0 : i32, i32
  }
  func.func @transform_5(%arg0: i32) -> (i32, i32) {
    %c0_i32 = arith.constant 0 : i32
    %c0_i32_0 = arith.constant 0 : i32
    %c0_i32_1 = arith.constant 0 : i32
    return %c0_i32, %c0_i32_0 : i32, i32
  }
  func.func @transform_6(%arg0: i32) -> (i32, i32) {
    %c0_i32 = arith.constant 0 : i32
    %c0_i32_0 = arith.constant 0 : i32
    %c0_i32_1 = arith.constant 0 : i32
    return %c0_i32, %c0_i32_0 : i32, i32
  }
  func.func @transform_7(%arg0: i32) -> (i32, i32) {
    %c0_i32 = arith.constant 0 : i32
    %c0_i32_0 = arith.constant 0 : i32
    %c0_i32_1 = arith.constant 0 : i32
    return %c0_i32, %c0_i32_0 : i32, i32
  }
  func.func @transform_8(%arg0: i32) -> (i32, i32) {
    %c0_i32 = arith.constant 0 : i32
    %c0_i32_0 = arith.constant 0 : i32
    %c0_i32_1 = arith.constant 0 : i32
    return %c0_i32, %c0_i32_0 : i32, i32
  }
  func.func @transform_9(%arg0: i32) -> (i32, i32, i32) {
    %c0_i32 = arith.constant 0 : i32
    %c0_i32_0 = arith.constant 0 : i32
    %c0_i32_1 = arith.constant 0 : i32
    return %arg0, %c0_i32, %c0_i32_0 : i32, i32, i32
  }
}

module attributes {stable_mosaic.version = 11 : i64} {
  func.func @_critic_heads_kernel(%arg0: i32, %arg1: memref<8x12xf32, #tpu.memory_space<vmem>>, %arg2: memref<8x4xf32, #tpu.memory_space<vmem>>, %arg3: memref<12x32xf32, #tpu.memory_space<vmem>>, %arg4: memref<4x32xf32, #tpu.memory_space<vmem>>, %arg5: memref<1x32xf32, #tpu.memory_space<vmem>>, %arg6: memref<32x32xf32, #tpu.memory_space<vmem>>, %arg7: memref<1x32xf32, #tpu.memory_space<vmem>>, %arg8: memref<1x32xf32, #tpu.memory_space<vmem>>, %arg9: memref<1x1xf32, #tpu.memory_space<vmem>>, %arg10: memref<1x1x8xf32, #tpu.memory_space<vmem>>) attributes {dimension_semantics = [#tpu.dimension_semantics<parallel>], iteration_bounds = array<i64: 1>, scalar_prefetch = 0 : i64, scratch_operands = 0 : i64, tpu.core_type = #tpu.core_type<tc>, window_params = [{transform_indices = @transform_0, window_bounds = array<i64: 8, 12>}, {transform_indices = @transform_1, window_bounds = array<i64: 8, 4>}, {pipeline_mode = #tpu.pipeline_mode<synchronous>, transform_indices = @transform_2, window_bounds = array<i64: 12, 32>}, {pipeline_mode = #tpu.pipeline_mode<synchronous>, transform_indices = @transform_3, window_bounds = array<i64: 4, 32>}, {pipeline_mode = #tpu.pipeline_mode<synchronous>, transform_indices = @transform_4, window_bounds = array<i64: 1, 32>}, {pipeline_mode = #tpu.pipeline_mode<synchronous>, transform_indices = @transform_5, window_bounds = array<i64: 32, 32>}, {pipeline_mode = #tpu.pipeline_mode<synchronous>, transform_indices = @transform_6, window_bounds = array<i64: 1, 32>}, {pipeline_mode = #tpu.pipeline_mode<synchronous>, transform_indices = @transform_7, window_bounds = array<i64: 1, 32>}, {pipeline_mode = #tpu.pipeline_mode<synchronous>, transform_indices = @transform_8, window_bounds = array<i64: 1, 1>}, {transform_indices = @transform_9, window_bounds = array<i64: 1, 1, 8>}]} {
    %c0 = arith.constant 0 : index
    %c0_0 = arith.constant 0 : index
    %0 = vector.load %arg1[%c0, %c0_0] : memref<8x12xf32, #tpu.memory_space<vmem>>, vector<8x12xf32>
    %c0_1 = arith.constant 0 : index
    %c0_2 = arith.constant 0 : index
    %1 = vector.load %arg2[%c0_1, %c0_2] : memref<8x4xf32, #tpu.memory_space<vmem>>, vector<8x4xf32>
    %c0_3 = arith.constant 0 : index
    %c0_4 = arith.constant 0 : index
    %2 = vector.load %arg3[%c0_3, %c0_4] : memref<12x32xf32, #tpu.memory_space<vmem>>, vector<12x32xf32>
    %cst = arith.constant dense<0.000000e+00> : vector<8x32xf32>
    %3 = tpu.matmul %0, %2, %cst {dimension_numbers = #tpu.dot_dimension_numbers<[1], [0], [0], [1], [0, 0, 1, 1], [], []>} : vector<8x12xf32>, vector<12x32xf32>, vector<8x32xf32> -> vector<8x32xf32>
    %c0_5 = arith.constant 0 : index
    %c0_6 = arith.constant 0 : index
    %4 = vector.load %arg4[%c0_5, %c0_6] : memref<4x32xf32, #tpu.memory_space<vmem>>, vector<4x32xf32>
    %cst_7 = arith.constant dense<0.000000e+00> : vector<8x32xf32>
    %5 = tpu.matmul %1, %4, %cst_7 {dimension_numbers = #tpu.dot_dimension_numbers<[1], [0], [0], [1], [0, 0, 1, 1], [], []>} : vector<8x4xf32>, vector<4x32xf32>, vector<8x32xf32> -> vector<8x32xf32>
    %6 = arith.addf %3, %5 : vector<8x32xf32>
    %c0_8 = arith.constant 0 : index
    %c0_9 = arith.constant 0 : index
    %7 = vector.load %arg5[%c0_8, %c0_9] : memref<1x32xf32, #tpu.memory_space<vmem>>, vector<1x32xf32>
    %8 = vector.broadcast %7 : vector<1x32xf32> to vector<8x32xf32>
    %9 = arith.addf %6, %8 : vector<8x32xf32>
    %cst_10 = arith.constant 0.000000e+00 : f32
    %10 = vector.broadcast %cst_10 : f32 to vector<8x32xf32>
    %11 = arith.maximumf %9, %10 : vector<8x32xf32>
    %c0_11 = arith.constant 0 : index
    %c0_12 = arith.constant 0 : index
    %12 = vector.load %arg6[%c0_11, %c0_12] : memref<32x32xf32, #tpu.memory_space<vmem>>, vector<32x32xf32>
    %cst_13 = arith.constant dense<0.000000e+00> : vector<8x32xf32>
    %13 = tpu.matmul %11, %12, %cst_13 {dimension_numbers = #tpu.dot_dimension_numbers<[1], [0], [0], [1], [0, 0, 1, 1], [], []>} : vector<8x32xf32>, vector<32x32xf32>, vector<8x32xf32> -> vector<8x32xf32>
    %c0_14 = arith.constant 0 : index
    %c0_15 = arith.constant 0 : index
    %14 = vector.load %arg7[%c0_14, %c0_15] : memref<1x32xf32, #tpu.memory_space<vmem>>, vector<1x32xf32>
    %15 = vector.broadcast %14 : vector<1x32xf32> to vector<8x32xf32>
    %16 = arith.addf %13, %15 : vector<8x32xf32>
    %cst_16 = arith.constant 0.000000e+00 : f32
    %17 = vector.broadcast %cst_16 : f32 to vector<8x32xf32>
    %18 = arith.maximumf %16, %17 : vector<8x32xf32>
    %c0_17 = arith.constant 0 : index
    %c0_18 = arith.constant 0 : index
    %19 = vector.load %arg8[%c0_17, %c0_18] : memref<1x32xf32, #tpu.memory_space<vmem>>, vector<1x32xf32>
    "tpu.trace_start"() <{level = 10 : i32, message = "qm,bm->qb"}> : () -> ()
    %cst_19 = arith.constant dense<0.000000e+00> : vector<1x8xf32>
    %20 = tpu.matmul %19, %18, %cst_19 {dimension_numbers = #tpu.dot_dimension_numbers<[1], [1], [0], [0], [0, 0, 1, 0], [], []>} : vector<1x32xf32>, vector<8x32xf32>, vector<1x8xf32> -> vector<1x8xf32>
    "tpu.trace_stop"() : () -> ()
    %c0_20 = arith.constant 0 : index
    %c0_21 = arith.constant 0 : index
    %21 = vector.load %arg9[%c0_20, %c0_21] : memref<1x1xf32, #tpu.memory_space<vmem>>, vector<1x1xf32>
    %22 = vector.broadcast %21 : vector<1x1xf32> to vector<1x8xf32>
    %23 = arith.addf %20, %22 : vector<1x8xf32>
    %24 = vector.shape_cast %23 : vector<1x8xf32> to vector<1x1x8xf32>
    %c0_22 = arith.constant 0 : index
    %c0_23 = arith.constant 0 : index
    %c0_24 = arith.constant 0 : index
    %25 = vector.load %arg10[%c0_22, %c0_23, %c0_24] : memref<1x1x8xf32, #tpu.memory_space<vmem>>, vector<1x1x8xf32>
    tpu.vector_store %arg10[%c0_22, %c0_23, %c0_24], %24 {strides = array<i32>} : memref<1x1x8xf32, #tpu.memory_space<vmem>>, vector<1x1x8xf32>,
    return
  }
  func.func @transform_0(%arg0: i32) -> (i32, i32) {
    %c0_i32 = arith.constant 0 : i32
    %c0_i32_0 = arith.constant 0 : i32
    return %arg0, %c0_i32 : i32, i32
  }
  func.func @transform_1(%arg0: i32) -> (i32, i32) {
    %c0_i32 = arith.constant 0 : i32
    %c0_i32_0 = arith.constant 0 : i32
    return %arg0, %c0_i32 : i32, i32
  }
  func.func @transform_2(%arg0: i32) -> (i32, i32) {
    %c0_i32 = arith.constant 0 : i32
    %c0_i32_0 = arith.constant 0 : i32
    %c0_i32_1 = arith.constant 0 : i32
    return %c0_i32, %c0_i32_0 : i32, i32
  }
  func.func @transform_3(%arg0: i32) -> (i32, i32) {
    %c0_i32 = arith.constant 0 : i32
    %c0_i32_0 = arith.constant 0 : i32
    %c0_i32_1 = arith.constant 0 : i32
    return %c0_i32, %c0_i32_0 : i32, i32
  }
  func.func @transform_4(%arg0: i32) -> (i32, i32) {
    %c0_i32 = arith.constant 0 : i32
    %c0_i32_0 = arith.constant 0 : i32
    %c0_i32_1 = arith.constant 0 : i32
    return %c0_i32, %c0_i32_0 : i32, i32
  }
  func.func @transform_5(%arg0: i32) -> (i32, i32) {
    %c0_i32 = arith.constant 0 : i32
    %c0_i32_0 = arith.constant 0 : i32
    %c0_i32_1 = arith.constant 0 : i32
    return %c0_i32, %c0_i32_0 : i32, i32
  }
  func.func @transform_6(%arg0: i32) -> (i32, i32) {
    %c0_i32 = arith.constant 0 : i32
    %c0_i32_0 = arith.constant 0 : i32
    %c0_i32_1 = arith.constant 0 : i32
    return %c0_i32, %c0_i32_0 : i32, i32
  }
  func.func @transform_7(%arg0: i32) -> (i32, i32) {
    %c0_i32 = arith.constant 0 : i32
    %c0_i32_0 = arith.constant 0 : i32
    %c0_i32_1 = arith.constant 0 : i32
    return %c0_i32, %c0_i32_0 : i32, i32
  }
  func.func @transform_8(%arg0: i32) -> (i32, i32) {
    %c0_i32 = arith.constant 0 : i32
    %c0_i32_0 = arith.constant 0 : i32
    %c0_i32_1 = arith.constant 0 : i32
    return %c0_i32, %c0_i32_0 : i32, i32
  }
  func.func @transform_9(%arg0: i32) -> (i32, i32, i32) {
    %c0_i32 = arith.constant 0 : i32
    %c0_i32_0 = arith.constant 0 : i32
    %c0_i32_1 = arith.constant 0 : i32
    return %arg0, %c0_i32, %c0_i32_0 : i32, i32, i32
  }
}

</mosaic_0001>

<bundles_post_ra>
// kernel: tpu_custom_call.1
= control target key start
LH: loop header
LB: loop body
LE: loop exit
PB: predicated region body
PF: predicated region fallthrough
CT: control target
= control target key end

     0   :  { %s673_s0 = inlined_call_operand.hbm [shape: f32[8,12], index: 0, kind: input, shape index: {}]   ;;  %s674_s1 = inlined_call_operand.vmem [shape: f32[8,4], index: 1, kind: input, shape index: {}]   ;;  %s675_s2 = inlined_call_operand.vmem [shape: f32[12,32], index: 2, kind: input, shape index: {}]   ;;  %s676_s3 = inlined_call_operand.hbm [shape: f32[4,32], index: 3, kind: input, shape index: {}]   ;;  %s677_s4 = inlined_call_operand.vmem [shape: f32[1,32], index: 4, kind: input, shape index: {}]   ;;  %s678_s5 = inlined_call_operand.hbm [shape: f32[32,32], index: 5, kind: input, shape index: {}]   ;;  %s679_s6 = inlined_call_operand.vmem [shape: f32[1,32], index: 6, kind: input, shape index: {}]   ;;  %s680_s7 = inlined_call_operand.vmem [shape: f32[1,32], index: 7, kind: input, shape index: {}]   ;;  %s681_s8 = inlined_call_operand.<no memory space> [shape: f32[1,1], index: 8, kind: input, shape index: {}]   ;;  %s682_s9 = inlined_call_operand.hbm [shape: f32[1,1,8], index: 9, kind: output, shape index: {}]  }
   0x1   :  { %v14_v0 = vstv %s681_s8 }
   0x2   :  { %15 = vst [vmem:[#allocation2] sm:$0x1] %v14_v0 }
   0x3   :  { %16 = vsyncpa [#allocation4], 0 }
   0x4   :  { %17 = vsyncpa [#allocation7], 0 }
   0x5   :  { %18 = vsyncpa [#allocation5], 0  ;;  %s577_s11 = smov [#allocation6]   ;;  %s578_s13 = smov [#allocation3]  }
   0x6   :  { %s39_s12 = sshll.u32 %s577_s11, 4  ;;  %s25_s14 = sshll.u32 %s578_s13, 4  ;;  %s40_s12 = int_to_ptr.vmem [resolvable:$true] %s39_s12  ;;  %s26_s14 = int_to_ptr.vmem [resolvable:$true] %s25_s14 }
   0x7   :  { %s499_s15 = scalar_lea.vmem %s40_s12, 64  ;;  %p504_p1 = scmp.lt.s32.totalorder %s40_s12, %s40_s12 }
   0x8   :  { %p500_p0 = scmp.ne.s32.totalorder %s40_s12, %s499_s15  ;;  %p505_p2 = scmp.lt.s32.totalorder %s499_s15, %s499_s15 }
   0xa   :  { %p506_p3 = por %p505_p2, %p504_p1 }
   0xc   :  { %p507_p4 = pnand %p506_p3, %p500_p0 }
   0xe   :  { %510 = shalt.err (!%p507_p4)
}
   0xf   :  { %42 = dma.hbm_to_vmem [thread:$0]  %s676_s3, 64, %s40_s12, [#allocation7]  }
  0x10   :  { %s519_s8 = scalar_lea.vmem %s26_s14, 128  ;;  %p524_p6 = scmp.lt.s32.totalorder %s26_s14, %s26_s14 }
  0x11   :  { %p520_p5 = scmp.ne.s32.totalorder %s26_s14, %s519_s8  ;;  %p525_p7 = scmp.lt.s32.totalorder %s519_s8, %s519_s8 }
  0x13   :  { %p526_p8 = por %p525_p7, %p524_p6 }
  0x15   :  { %p527_p9 = pnand %p526_p8, %p520_p5 }
  0x17   :  { %530 = shalt.err (!%p527_p9)
}
  0x18   :  { %28 = dma.hbm_to_vmem [thread:$0]  %s673_s0, 128, %s26_s14, [#allocation4]  }
  0x19   :  { %s579_s20 = smov [#allocation8]  }
  0x1a   :  { %s50_s21 = sshll.u32 %s579_s20, 4  ;;  %s51_s21 = int_to_ptr.vmem [resolvable:$true] %s50_s21 }
  0x1b   :  { %s539_s22 = scalar_lea.vmem %s51_s21, 512  ;;  %p544_p11 = scmp.lt.s32.totalorder %s51_s21, %s51_s21 }
  0x1c   :  { %p540_p10 = scmp.ne.s32.totalorder %s51_s21, %s539_s22  ;;  %p545_p12 = scmp.lt.s32.totalorder %s539_s22, %s539_s22 }
  0x1e   :  { %p546_p13 = por %p545_p12, %p544_p11 }
  0x20   :  { %p547_p0 = pnand %p546_p13, %p540_p10 }
  0x22   :  { %550 = shalt.err (!%p547_p0)
}
  0x23   :  { %s580_s3 = smov 128   ;;  %s581_s23 = smov 8  }
  0x24   :  { %56 = dma.hbm_to_vmem [thread:$0]  %s678_s5, 512, %s51_s21, [#allocation7], %s580_s3, %s580_s3, %s581_s23  }
  0x25   :  { %571 = dma.done.wait [#allocation4], 128  }
  0x26   :  { %572 = vsyncadd [#allocation4], 4294967168 }
  0x27   :  { %573 = dma.done.wait [#allocation7], 576  }
  0x28   :  { %574 = vsyncadd [#allocation7], 4294966720  ;;  %v582_v1 = vmov 0.0   ;;  %vm583_vm0 = vmmov 0   ;;  %vm81_vm1 = vcmask 1043456   ;;  %vm77_vm2 = vcmask 31744  }
  0x29   :  { %453 = vmatprep.subr.mxu0 %v582_v1  ;;  %458 = vmatprep.subr.mxu1 %v582_v1  ;;  %v76_v2 = vld [vmem:[#allocation6] sm:$0xf]  ;;  %v73_v4 = vld [vmem:[%s674_s1] sm:$0xff]  ;;  %vm155_vm3 = vcmask 97280   ;;  %v242_v9 = vld [vmem:[#allocation8 + $0x8] sm:$0xff]  ;;  %vm252_vm4 = vcmask 261120   ;;  %v334_v27 = vlaneseq }
  0x2a   :  { %455 = vmatprep.mubr.msk.f32.mxu0 %vm583_vm0, %v582_v1  ;;  %462 = vmatprep.mubr.msk.f32.mxu1 %vm583_vm0, %v582_v1  ;;  %v75_v3 = vld [vmem:[%s675_s2 + $0x8] sm:$0xf]  ;;  %v74_v5 = vld [vmem:[%s675_s2] sm:$0xff]  ;;  %v241_v10 = vld [vmem:[#allocation8] sm:$0xff]  ;;  %v584_v20 = vmov 0   ;;  %s585_s12 = smov [#allocation9]  }
  0x2b   :  { %454 = vmatpush3.msk.msra.mxu0 %vm81_vm1, %v76_v2  ;;  %459 = vmatpush3.msk.msra.mxu1 %vm81_vm1, %v75_v3  ;;  %v72_v6 = vld [vmem:[#allocation3] sm:$0xff]  ;;  %v436_v14 = vld [vmem:[%s677_s4] ss:$0 sm:$0xff]  ;;  %v335_v28 = vshrl.u32 %v334_v27, 7  ;;  %s422_s13 = sshll.u32 %s585_s12, 4  ;;  %vm414_vm5 = vcmask 57344   ;;  %s423_s13 = int_to_ptr.vmem [resolvable:$true] %s422_s13 }
  0x2c   :  { %456 = vmatmul.mubr.msk.f32.vlgmr.msra.gmra.mxu0 %vm77_vm2, %v73_v4  ;;  %460 = vmatprep.subr.mxu1 %v582_v1  ;;  %v244_v7 = vld [vmem:[#allocation8 + $0x18] sm:$0xff]  ;;  %v243_v8 = vld [vmem:[#allocation8 + $0x10] sm:$0xff]  ;;  %s555_s14 = scalar_lea.vmem %s423_s13, 32  ;;  %p556_p2 = scmp.lt.s32.totalorder %s423_s13, %s423_s13 }
  0x2d   :  { %461 = vmatpush3.msra.mxu1 %v74_v5  ;;  %465 = vmatprep.subr.mxu0 %v582_v1  ;;  %v328_v19 = vld [vmem:[#allocation2] sm:$0x1]  ;;  %v336_v29 = vsub.s32 0, %v335_v28 }
  0x2e   :  { %463 = vmatmul.mubr.msk.f32.vlgmr.msra.gmra.mxu1 %vm155_vm3, %v72_v6  ;;  %473 = vmatprep.mubr.msk.f32.mxu0 %vm583_vm0, %v582_v1  ;;  %v437_v21 = vld [vmem:[%s679_s6] ss:$0 sm:$0xff]  ;;  %s551_s6 = scalar_lea.vmem %s423_s13, 16 }
  0x2f   :  { %476 = vmatprep.subr.mxu1 %v582_v1  ;;  %478 = vmatprep.mubr.msk.f32.mxu1 %vm583_vm0, %v582_v1  ;;  %v327_v26 = vld [vmem:[%s680_s7] sm:$0x1]  ;;  %p552_p1 = scmp.ne.s32.totalorder %s423_s13, %s551_s6  ;;  %p557_p3 = scmp.lt.s32.totalorder %s555_s14, %s551_s6 }
  0x30   :  { %466 = vmatpush3.msra.mxu0 %v244_v7  ;;  %490 = vset.pattern.permute.xlu0 %v584_v20 }
  0x31   :  { %467 = vmatprep.subr.mxu0 %v582_v1  ;;  %331 = vperm.xlu0 %490, %v328_v19   ;;  %p558_p4 = por %p557_p3, %p556_p2 }
  0x32   :  { %468 = vmatpush3.msra.mxu0 %v243_v8 }
  0x33   :  { %469 = vmatprep.subr.mxu0 %v582_v1  ;;  %p559_p5 = pnand %p558_p4, %p552_p1 }
  0x34   :  { %470 = vmatpush3.msra.mxu0 %v242_v9 }
  0x35   :  { %471 = vmatprep.subr.mxu0 %v582_v1 }
  0x36   :  { %472 = vmatpush3.msra.mxu0 %v241_v10 }
  0xac   :  { %v332_v30 = vpop.permute.xlu0 %331 }
  0xad   :  { %v337_v31 = vrot.slane %v332_v30, %v336_v29 }
  0xec   :  { %v151_v11 = vpop.f32.mrf.mxu0 }
  0xee   :  { %v457_v12 = vpop.f32.mrf.mxu0  ;;  %v228_v13 = vpop.f32.mrf.mxu1 }
  0xef   :  { %v229_v15 = vadd.f32 %v228_v13, %v151_v11 }
  0xf0   :  { %v464_v16 = vpop.f32.mrf.mxu1 }
  0xf1   :  { %v239_v17 = vadd.f32 %v436_v14, %v229_v15 }
  0xf3   :  { %v240_v18 = vmax.f32 %v239_v17, 0.0 }
  0xf5   :  { %474 = vmatmul.mubr.msk.f32.vlgmr.msra.gmra.mxu0 %vm252_vm4, %v240_v18 }
 0x1b5   :  { %v322_v22 = vpop.f32.mrf.mxu0 }
 0x1b6   :  { %v323_v23 = vadd.f32 %v437_v21, %v322_v22 }
 0x1b7   :  { %v475_v24 = vpop.f32.mrf.mxu0 }
 0x1b8   :  { %v326_v25 = vmax.f32 %v323_v23, 0.0 }
 0x1ba   :  { %477 = vmatpush3.xpose.msk.msra.mxu1 %vm252_vm4, %v326_v25 }
 0x1bd   :  { %479 = vmatmul.mubr.msk.f32.vlgmr.msra.gmra.mxu1 %vm252_vm4, %v327_v26 }
 0x27d   :  { %v410_v32 = vpop.f32.mrf.mxu1 }
 0x27e   :  { %v411_v33 = vadd.f32 %v410_v32, %v337_v31 }
 0x27f   :  { %v480_v34 = vpop.f32.mrf.mxu1 }
 0x280   :  { %415 = vst.msk [vmem:[#allocation9] sm:$0x1] %vm414_vm5, %v411_v33 }
 0x281   :  { %562 = shalt.err (!%p559_p5)
}
 0x282   :  { %425 = dma.vmem_to_hbm [thread:$0]  %s423_s13, 16, %s682_s9, [#allocation5]  }
 0x283   :  { %575 = dma.done.wait [#allocation5], 16  }
 0x284   :  { %576 = vsyncadd [#allocation5], 4294967280 }
 0x285   :  { %429 = vsyncpa [#allocation4], 1 }
 0x286   :  { %430 = vsyncpa [#allocation7], 1 }
 0x287   :  { %431 = vsyncpa [#allocation5], 1 }

// kernel: tpu_custom_call.1
= control target key start
LH: loop header
LB: loop body
LE: loop exit
PB: predicated region body
PF: predicated region fallthrough
CT: control target
= control target key end

     0   :  { %s673_s0 = inlined_call_operand.hbm [shape: f32[8,12], index: 0, kind: input, shape index: {}]   ;;  %s674_s1 = inlined_call_operand.vmem [shape: f32[8,4], index: 1, kind: input, shape index: {}]   ;;  %s675_s2 = inlined_call_operand.vmem [shape: f32[12,32], index: 2, kind: input, shape index: {}]   ;;  %s676_s3 = inlined_call_operand.hbm [shape: f32[4,32], index: 3, kind: input, shape index: {}]   ;;  %s677_s4 = inlined_call_operand.vmem [shape: f32[1,32], index: 4, kind: input, shape index: {}]   ;;  %s678_s5 = inlined_call_operand.hbm [shape: f32[32,32], index: 5, kind: input, shape index: {}]   ;;  %s679_s6 = inlined_call_operand.vmem [shape: f32[1,32], index: 6, kind: input, shape index: {}]   ;;  %s680_s7 = inlined_call_operand.vmem [shape: f32[1,32], index: 7, kind: input, shape index: {}]   ;;  %s681_s8 = inlined_call_operand.<no memory space> [shape: f32[1,1], index: 8, kind: input, shape index: {}]   ;;  %s682_s9 = inlined_call_operand.hbm [shape: f32[1,1,8], index: 9, kind: output, shape index: {}]  }
   0x1   :  { %v14_v0 = vstv %s681_s8 }
   0x2   :  { %15 = vst [vmem:[#allocation2] sm:$0x1] %v14_v0 }
   0x3   :  { %16 = vsyncpa [#allocation4], 0 }
   0x4   :  { %17 = vsyncpa [#allocation7], 0 }
   0x5   :  { %18 = vsyncpa [#allocation5], 0  ;;  %s577_s11 = smov [#allocation6]   ;;  %s578_s13 = smov [#allocation3]  }
   0x6   :  { %s39_s12 = sshll.u32 %s577_s11, 4  ;;  %s25_s14 = sshll.u32 %s578_s13, 4  ;;  %s40_s12 = int_to_ptr.vmem [resolvable:$true] %s39_s12  ;;  %s26_s14 = int_to_ptr.vmem [resolvable:$true] %s25_s14 }
   0x7   :  { %s499_s15 = scalar_lea.vmem %s40_s12, 64  ;;  %p504_p1 = scmp.lt.s32.totalorder %s40_s12, %s40_s12 }
   0x8   :  { %p500_p0 = scmp.ne.s32.totalorder %s40_s12, %s499_s15  ;;  %p505_p2 = scmp.lt.s32.totalorder %s499_s15, %s499_s15 }
   0xa   :  { %p506_p3 = por %p505_p2, %p504_p1 }
   0xc   :  { %p507_p4 = pnand %p506_p3, %p500_p0 }
   0xe   :  { %510 = shalt.err (!%p507_p4)
}
   0xf   :  { %42 = dma.hbm_to_vmem [thread:$0]  %s676_s3, 64, %s40_s12, [#allocation7]  }
  0x10   :  { %s519_s8 = scalar_lea.vmem %s26_s14, 128  ;;  %p524_p6 = scmp.lt.s32.totalorder %s26_s14, %s26_s14 }
  0x11   :  { %p520_p5 = scmp.ne.s32.totalorder %s26_s14, %s519_s8  ;;  %p525_p7 = scmp.lt.s32.totalorder %s519_s8, %s519_s8 }
  0x13   :  { %p526_p8 = por %p525_p7, %p524_p6 }
  0x15   :  { %p527_p9 = pnand %p526_p8, %p520_p5 }
  0x17   :  { %530 = shalt.err (!%p527_p9)
}
  0x18   :  { %28 = dma.hbm_to_vmem [thread:$0]  %s673_s0, 128, %s26_s14, [#allocation4]  }
  0x19   :  { %s579_s20 = smov [#allocation8]  }
  0x1a   :  { %s50_s21 = sshll.u32 %s579_s20, 4  ;;  %s51_s21 = int_to_ptr.vmem [resolvable:$true] %s50_s21 }
  0x1b   :  { %s539_s22 = scalar_lea.vmem %s51_s21, 512  ;;  %p544_p11 = scmp.lt.s32.totalorder %s51_s21, %s51_s21 }
  0x1c   :  { %p540_p10 = scmp.ne.s32.totalorder %s51_s21, %s539_s22  ;;  %p545_p12 = scmp.lt.s32.totalorder %s539_s22, %s539_s22 }
  0x1e   :  { %p546_p13 = por %p545_p12, %p544_p11 }
  0x20   :  { %p547_p0 = pnand %p546_p13, %p540_p10 }
  0x22   :  { %550 = shalt.err (!%p547_p0)
}
  0x23   :  { %s580_s3 = smov 128   ;;  %s581_s23 = smov 8  }
  0x24   :  { %56 = dma.hbm_to_vmem [thread:$0]  %s678_s5, 512, %s51_s21, [#allocation7], %s580_s3, %s580_s3, %s581_s23  }
  0x25   :  { %571 = dma.done.wait [#allocation4], 128  }
  0x26   :  { %572 = vsyncadd [#allocation4], 4294967168 }
  0x27   :  { %573 = dma.done.wait [#allocation7], 576  }
  0x28   :  { %574 = vsyncadd [#allocation7], 4294966720  ;;  %v582_v1 = vmov 0.0   ;;  %vm583_vm0 = vmmov 0   ;;  %vm81_vm1 = vcmask 1043456   ;;  %vm77_vm2 = vcmask 31744  }
  0x29   :  { %453 = vmatprep.subr.mxu0 %v582_v1  ;;  %458 = vmatprep.subr.mxu1 %v582_v1  ;;  %v76_v2 = vld [vmem:[#allocation6] sm:$0xf]  ;;  %v73_v4 = vld [vmem:[%s674_s1] sm:$0xff]  ;;  %vm155_vm3 = vcmask 97280   ;;  %v242_v9 = vld [vmem:[#allocation8 + $0x8] sm:$0xff]  ;;  %vm252_vm4 = vcmask 261120   ;;  %v334_v27 = vlaneseq }
  0x2a   :  { %455 = vmatprep.mubr.msk.f32.mxu0 %vm583_vm0, %v582_v1  ;;  %462 = vmatprep.mubr.msk.f32.mxu1 %vm583_vm0, %v582_v1  ;;  %v75_v3 = vld [vmem:[%s675_s2 + $0x8] sm:$0xf]  ;;  %v74_v5 = vld [vmem:[%s675_s2] sm:$0xff]  ;;  %v241_v10 = vld [vmem:[#allocation8] sm:$0xff]  ;;  %v584_v20 = vmov 0   ;;  %s585_s12 = smov [#allocation9]  }
  0x2b   :  { %454 = vmatpush3.msk.msra.mxu0 %vm81_vm1, %v76_v2  ;;  %459 = vmatpush3.msk.msra.mxu1 %vm81_vm1, %v75_v3  ;;  %v72_v6 = vld [vmem:[#allocation3] sm:$0xff]  ;;  %v436_v14 = vld [vmem:[%s677_s4] ss:$0 sm:$0xff]  ;;  %v335_v28 = vshrl.u32 %v334_v27, 7  ;;  %s422_s13 = sshll.u32 %s585_s12, 4  ;;  %vm414_vm5 = vcmask 57344   ;;  %s423_s13 = int_to_ptr.vmem [resolvable:$true] %s422_s13 }
  0x2c   :  { %456 = vmatmul.mubr.msk.f32.vlgmr.msra.gmra.mxu0 %vm77_vm2, %v73_v4  ;;  %460 = vmatprep.subr.mxu1 %v582_v1  ;;  %v244_v7 = vld [vmem:[#allocation8 + $0x18] sm:$0xff]  ;;  %v243_v8 = vld [vmem:[#allocation8 + $0x10] sm:$0xff]  ;;  %s555_s14 = scalar_lea.vmem %s423_s13, 32  ;;  %p556_p2 = scmp.lt.s32.totalorder %s423_s13, %s423_s13 }
  0x2d   :  { %461 = vmatpush3.msra.mxu1 %v74_v5  ;;  %465 = vmatprep.subr.mxu0 %v582_v1  ;;  %v328_v19 = vld [vmem:[#allocation2] sm:$0x1]  ;;  %v336_v29 = vsub.s32 0, %v335_v28 }
  0x2e   :  { %463 = vmatmul.mubr.msk.f32.vlgmr.msra.gmra.mxu1 %vm155_vm3, %v72_v6  ;;  %473 = vmatprep.mubr.msk.f32.mxu0 %vm583_vm0, %v582_v1  ;;  %v437_v21 = vld [vmem:[%s679_s6] ss:$0 sm:$0xff]  ;;  %s551_s6 = scalar_lea.vmem %s423_s13, 16 }
  0x2f   :  { %476 = vmatprep.subr.mxu1 %v582_v1  ;;  %478 = vmatprep.mubr.msk.f32.mxu1 %vm583_vm0, %v582_v1  ;;  %v327_v26 = vld [vmem:[%s680_s7] sm:$0x1]  ;;  %p552_p1 = scmp.ne.s32.totalorder %s423_s13, %s551_s6  ;;  %p557_p3 = scmp.lt.s32.totalorder %s555_s14, %s551_s6 }
  0x30   :  { %466 = vmatpush3.msra.mxu0 %v244_v7  ;;  %490 = vset.pattern.permute.xlu0 %v584_v20 }
  0x31   :  { %467 = vmatprep.subr.mxu0 %v582_v1  ;;  %331 = vperm.xlu0 %490, %v328_v19   ;;  %p558_p4 = por %p557_p3, %p556_p2 }
  0x32   :  { %468 = vmatpush3.msra.mxu0 %v243_v8 }
  0x33   :  { %469 = vmatprep.subr.mxu0 %v582_v1  ;;  %p559_p5 = pnand %p558_p4, %p552_p1 }
  0x34   :  { %470 = vmatpush3.msra.mxu0 %v242_v9 }
  0x35   :  { %471 = vmatprep.subr.mxu0 %v582_v1 }
  0x36   :  { %472 = vmatpush3.msra.mxu0 %v241_v10 }
  0xac   :  { %v332_v30 = vpop.permute.xlu0 %331 }
  0xad   :  { %v337_v31 = vrot.slane %v332_v30, %v336_v29 }
  0xec   :  { %v151_v11 = vpop.f32.mrf.mxu0 }
  0xee   :  { %v457_v12 = vpop.f32.mrf.mxu0  ;;  %v228_v13 = vpop.f32.mrf.mxu1 }
  0xef   :  { %v229_v15 = vadd.f32 %v228_v13, %v151_v11 }
  0xf0   :  { %v464_v16 = vpop.f32.mrf.mxu1 }
  0xf1   :  { %v239_v17 = vadd.f32 %v436_v14, %v229_v15 }
  0xf3   :  { %v240_v18 = vmax.f32 %v239_v17, 0.0 }
  0xf5   :  { %474 = vmatmul.mubr.msk.f32.vlgmr.msra.gmra.mxu0 %vm252_vm4, %v240_v18 }
 0x1b5   :  { %v322_v22 = vpop.f32.mrf.mxu0 }
 0x1b6   :  { %v323_v23 = vadd.f32 %v437_v21, %v322_v22 }
 0x1b7   :  { %v475_v24 = vpop.f32.mrf.mxu0 }
 0x1b8   :  { %v326_v25 = vmax.f32 %v323_v23, 0.0 }
 0x1ba   :  { %477 = vmatpush3.xpose.msk.msra.mxu1 %vm252_vm4, %v326_v25 }
 0x1bd   :  { %479 = vmatmul.mubr.msk.f32.vlgmr.msra.gmra.mxu1 %vm252_vm4, %v327_v26 }
 0x27d   :  { %v410_v32 = vpop.f32.mrf.mxu1 }
 0x27e   :  { %v411_v33 = vadd.f32 %v410_v32, %v337_v31 }
 0x27f   :  { %v480_v34 = vpop.f32.mrf.mxu1 }
 0x280   :  { %415 = vst.msk [vmem:[#allocation9] sm:$0x1] %vm414_vm5, %v411_v33 }
 0x281   :  { %562 = shalt.err (!%p559_p5)
}
 0x282   :  { %425 = dma.vmem_to_hbm [thread:$0]  %s423_s13, 16, %s682_s9, [#allocation5]  }
 0x283   :  { %575 = dma.done.wait [#allocation5], 16  }
 0x284   :  { %576 = vsyncadd [#allocation5], 4294967280 }
 0x285   :  { %429 = vsyncpa [#allocation4], 1 }
 0x286   :  { %430 = vsyncpa [#allocation7], 1 }
 0x287   :  { %431 = vsyncpa [#allocation5], 1 }

</bundles_post_ra>
